<compile_context>
chip_gen: v7x
topology: tpu7x:2x2x1
jax: 0.10.0
libtpu: 0.0.40
codegen_flags: <defaults>
</compile_context>

<pallas_src>
import functools

import jax
import jax.numpy as jnp
import numpy as np
from jax.experimental import pallas as pl
from jax.experimental.pallas import tpu as pltpu


def _round_up(n, m):
    return ((n + m - 1) // m) * m


# ---------------------------------------------------------------------------
# Fused kernel: GAP pool -> backbone projection -> fused hierarchical heads.
# TODO(synk): `features_2` (`model`) is an external backbone passed into
#             __init__; here it is replaced by a deterministic stand-in
#             (global average pool over H,W + linear projection C -> F).
# ---------------------------------------------------------------------------
def _fused_kernel(x_ref, wbb_ref, bbb_ref, wcat_ref, bcat_ref, out_ref, *, inv_hw):
    x = x_ref[...]                                     # [TB, C, H*W]
    pooled = jnp.sum(x, axis=-1) * inv_hw              # [TB, C]  single lane-dim reduce
    feat = (
        jnp.dot(pooled, wbb_ref[...], preferred_element_type=jnp.float32)
        + bbb_ref[...]
    )                                                  # [TB, F]  never leaves VMEM
    out_ref[...] = (
        jnp.dot(feat, wcat_ref[...], preferred_element_type=jnp.float32)
        + bcat_ref[...]
    )                                                  # [TB, N_pad] lane-dense store


# ---------------------------------------------------------------------------
# Full forward = fused stand-in backbone + hierarchical classifier heads.
# ---------------------------------------------------------------------------
def model_bn_3_forward(x, params, val):
    B, C, H, W = x.shape
    HW = H * W
    F = params["w_bb"].shape[1]
    C_species = params["w3"].shape[1]
    C_family = params["w2"].shape[1]
    C_order = params["w1"].shape[1]
    n_total = C_species + C_family + C_order
    N_pad = _round_up(n_total, 128)

    # --- wrapper-side layout plumbing (no kernel compute) --------------------
    # Reshape spatial dims so in-kernel pooling is a single lane-axis reduce.
    x3d = x.reshape(B, C, HW).astype(jnp.float32)

    # Fuse the 3 head weights into one [F, N_pad] GEMM operand.  Zero-padding
    # the skipped leading feature rows of w2/w3 reproduces the feature slicing
    # exactly while removing lane-misaligned slices from the kernel.
    w3_full = jnp.pad(params["w3"], ((2 * val, 0), (0, 0)))          # [F, C_species]
    w2_full = jnp.pad(params["w2"], ((val, 0), (0, 0)))              # [F, C_family]
    w1_full = params["w1"]                                           # [F, C_order]
    w_cat = jnp.concatenate([w3_full, w2_full, w1_full], axis=1)     # [F, n_total]
    w_cat = jnp.pad(w_cat, ((0, 0), (0, N_pad - n_total)))           # [F, N_pad]
    b_cat = jnp.concatenate([params["b3"], params["b2"], params["b1"]], axis=1)
    b_cat = jnp.pad(b_cat, ((0, 0), (0, N_pad - n_total)))           # [1, N_pad]

    # Pad batch so the sublane tile TILE_B is legal; slice back afterwards.
    TILE_B = 128 if B >= 128 else _round_up(B, 8)
    B_pad = _round_up(B, TILE_B)
    if B_pad != B:
        x3d = jnp.pad(x3d, ((0, B_pad - B), (0, 0), (0, 0)))

    out = pl.pallas_call(
        functools.partial(_fused_kernel, inv_hw=1.0 / HW),
        out_shape=jax.ShapeDtypeStruct((B_pad, N_pad), jnp.float32),
        grid=(B_pad // TILE_B,),
        in_specs=[
            pl.BlockSpec((TILE_B, C, HW), lambda i: (i, 0, 0)),   # batch-tiled input
            pl.BlockSpec((C, F), lambda i: (0, 0)),               # resident weights
            pl.BlockSpec((1, F), lambda i: (0, 0)),               # resident bias
            pl.BlockSpec((F, N_pad), lambda i: (0, 0)),           # fused head weight
            pl.BlockSpec((1, N_pad), lambda i: (0, 0)),           # fused head bias
        ],
        out_specs=pl.BlockSpec((TILE_B, N_pad), lambda i: (i, 0)),
        compiler_params=pltpu.CompilerParams(
            dimension_semantics=("parallel",)),
    )(x3d, params["w_bb"], params["b_bb"], w_cat, b_cat)

    species_out = out[:B, :C_species]
    family_out = out[:B, C_species:C_species + C_family]
    order_out = out[:B, C_species + C_family:n_total]
    return [species_out, family_out, order_out]


if __name__ == "__main__":
    # Small shapes consistent with the module's structure.
    B, C, H, W = 2, 4, 16, 16
    feature_size = 48                 # must be divisible by 3 for the split
    val = feature_size // 3           # 16
    classes = [24, 20, 16]            # [species, family, order] (scaled-down [555, 404, 50])

    key = jax.random.PRNGKey(0)
    kx, kwb, kw1, kb1, kw2, kb2, kw3, kb3 = jax.random.split(key, 8)

    x = jax.random.normal(kx, (B, C, H, W), dtype=jnp.float32)

    params = {
        # stand-in backbone projection (C -> feature_size)
        "w_bb": jax.random.normal(kwb, (C, feature_size), dtype=jnp.float32) * 0.1,
        "b_bb": jnp.zeros((1, feature_size), dtype=jnp.float32),
        # classifier_1: Linear(feature_size, classes[2])  -> order head
        "w1": jax.random.normal(kw1, (feature_size, classes[2]), dtype=jnp.float32) * 0.05,
        "b1": jax.random.normal(kb1, (1, classes[2]), dtype=jnp.float32) * 0.01,
        # classifier_2: Linear(feature_size - val, classes[1]) -> family head
        "w2": jax.random.normal(kw2, (feature_size - val, classes[1]), dtype=jnp.float32) * 0.05,
        "b2": jax.random.normal(kb2, (1, classes[1]), dtype=jnp.float32) * 0.01,
        # classifier_3: Linear(feature_size - 2*val, classes[0]) -> species head
        "w3": jax.random.normal(kw3, (feature_size - 2 * val, classes[0]), dtype=jnp.float32) * 0.05,
        "b3": jax.random.normal(kb3, (1, classes[0]), dtype=jnp.float32) * 0.01,
    }

    outs = model_bn_3_forward(x, params, val)
    outs = [jax.block_until_ready(o) for o in outs]

    # Pure-JAX reference for correctness.
    pooled = x.mean(axis=(2, 3))
    feat_ref = pooled @ params["w_bb"] + params["b_bb"]
    order_ref = feat_ref @ params["w1"] + params["b1"]
    family_ref = feat_ref[:, val:] @ params["w2"] + params["b2"]
    species_ref = feat_ref[:, 2 * val:] @ params["w3"] + params["b3"]
    refs = [species_ref, family_ref, order_ref]

    assert outs[0].shape == (B, classes[0])
    assert outs[1].shape == (B, classes[1])
    assert outs[2].shape == (B, classes[2])
    for got, want in zip(outs, refs):
        np.testing.assert_allclose(np.asarray(got), np.asarray(want), rtol=1e-5, atol=1e-5)

    print("KERNEL_OK")
</pallas_src>

<mosaic_0001>
module attributes {stable_mosaic.version = 11 : i64} {
  func.func @_fused_kernel(%arg0: i32, %arg1: memref<8x4x256xf32, #tpu.memory_space<vmem>>, %arg2: memref<4x48xf32, #tpu.memory_space<vmem>>, %arg3: memref<1x48xf32, #tpu.memory_space<vmem>>, %arg4: memref<48x128xf32, #tpu.memory_space<vmem>>, %arg5: memref<1x128xf32, #tpu.memory_space<vmem>>, %arg6: memref<8x128xf32, #tpu.memory_space<vmem>>) attributes {dimension_semantics = [#tpu.dimension_semantics<parallel>], iteration_bounds = array<i64: 1>, scalar_prefetch = 0 : i64, scratch_operands = 0 : i64, tpu.core_type = #tpu.core_type<tc>, window_params = [{transform_indices = @transform_0, window_bounds = array<i64: 8, 4, 256>}, {pipeline_mode = #tpu.pipeline_mode<synchronous>, transform_indices = @transform_1, window_bounds = array<i64: 4, 48>}, {pipeline_mode = #tpu.pipeline_mode<synchronous>, transform_indices = @transform_2, window_bounds = array<i64: 1, 48>}, {pipeline_mode = #tpu.pipeline_mode<synchronous>, transform_indices = @transform_3, window_bounds = array<i64: 48, 128>}, {pipeline_mode = #tpu.pipeline_mode<synchronous>, transform_indices = @transform_4, window_bounds = array<i64: 1, 128>}, {transform_indices = @transform_5, window_bounds = array<i64: 8, 128>}]} {
    %c0 = arith.constant 0 : index
    %c0_0 = arith.constant 0 : index
    %c0_1 = arith.constant 0 : index
    %0 = vector.load %arg1[%c0, %c0_0, %c0_1] : memref<8x4x256xf32, #tpu.memory_space<vmem>>, vector<8x4x256xf32>
    %cst = arith.constant dense<0.000000e+00> : vector<8x4xf32>
    %1 = vector.multi_reduction <add>, %0, %cst [2] : vector<8x4x256xf32> to vector<8x4xf32>
    %cst_2 = arith.constant 3.906250e-03 : f32
    %2 = vector.broadcast %cst_2 : f32 to vector<8x4xf32>
    %3 = arith.mulf %1, %2 : vector<8x4xf32>
    %c0_3 = arith.constant 0 : index
    %c0_4 = arith.constant 0 : index
    %4 = vector.load %arg2[%c0_3, %c0_4] : memref<4x48xf32, #tpu.memory_space<vmem>>, vector<4x48xf32>
    %cst_5 = arith.constant dense<0.000000e+00> : vector<8x48xf32>
    %5 = tpu.matmul %3, %4, %cst_5 {dimension_numbers = #tpu.dot_dimension_numbers<[1], [0], [0], [1], [0, 0, 1, 1], [], []>} : vector<8x4xf32>, vector<4x48xf32>, vector<8x48xf32> -> vector<8x48xf32>
    %c0_6 = arith.constant 0 : index
    %c0_7 = arith.constant 0 : index
    %6 = vector.load %arg3[%c0_6, %c0_7] : memref<1x48xf32, #tpu.memory_space<vmem>>, vector<1x48xf32>
    %7 = vector.broadcast %6 : vector<1x48xf32> to vector<8x48xf32>
    %8 = arith.addf %5, %7 : vector<8x48xf32>
    %c0_8 = arith.constant 0 : index
    %c0_9 = arith.constant 0 : index
    %9 = vector.load %arg4[%c0_8, %c0_9] : memref<48x128xf32, #tpu.memory_space<vmem>>, vector<48x128xf32>
    %cst_10 = arith.constant dense<0.000000e+00> : vector<8x128xf32>
    %10 = tpu.matmul %8, %9, %cst_10 {dimension_numbers = #tpu.dot_dimension_numbers<[1], [0], [0], [1], [0, 0, 1, 1], [], []>} : vector<8x48xf32>, vector<48x128xf32>, vector<8x128xf32> -> vector<8x128xf32>
    %c0_11 = arith.constant 0 : index
    %c0_12 = arith.constant 0 : index
    %11 = vector.load %arg5[%c0_11, %c0_12] : memref<1x128xf32, #tpu.memory_space<vmem>>, vector<1x128xf32>
    %12 = vector.broadcast %11 : vector<1x128xf32> to vector<8x128xf32>
    %13 = arith.addf %10, %12 : vector<8x128xf32>
    %c0_13 = arith.constant 0 : index
    %c0_14 = arith.constant 0 : index
    %14 = vector.load %arg6[%c0_13, %c0_14] : memref<8x128xf32, #tpu.memory_space<vmem>>, vector<8x128xf32>
    tpu.vector_store %arg6[%c0_13, %c0_14], %13 {strides = array<i32>} : memref<8x128xf32, #tpu.memory_space<vmem>>, vector<8x128xf32>,
    return
  }
  func.func @transform_0(%arg0: i32) -> (i32, i32, i32) {
    %c0_i32 = arith.constant 0 : i32
    %c0_i32_0 = arith.constant 0 : i32
    %c0_i32_1 = arith.constant 0 : i32
    return %arg0, %c0_i32, %c0_i32_0 : i32, i32, i32
  }
  func.func @transform_1(%arg0: i32) -> (i32, i32) {
    %c0_i32 = arith.constant 0 : i32
    %c0_i32_0 = arith.constant 0 : i32
    %c0_i32_1 = arith.constant 0 : i32
    return %c0_i32, %c0_i32_0 : i32, i32
  }
  func.func @transform_2(%arg0: i32) -> (i32, i32) {
    %c0_i32 = arith.constant 0 : i32
    %c0_i32_0 = arith.constant 0 : i32
    %c0_i32_1 = arith.constant 0 : i32
    return %c0_i32, %c0_i32_0 : i32, i32
  }
  func.func @transform_3(%arg0: i32) -> (i32, i32) {
    %c0_i32 = arith.constant 0 : i32
    %c0_i32_0 = arith.constant 0 : i32
    %c0_i32_1 = arith.constant 0 : i32
    return %c0_i32, %c0_i32_0 : i32, i32
  }
  func.func @transform_4(%arg0: i32) -> (i32, i32) {
    %c0_i32 = arith.constant 0 : i32
    %c0_i32_0 = arith.constant 0 : i32
    %c0_i32_1 = arith.constant 0 : i32
    return %c0_i32, %c0_i32_0 : i32, i32
  }
  func.func @transform_5(%arg0: i32) -> (i32, i32) {
    %c0_i32 = arith.constant 0 : i32
    %c0_i32_0 = arith.constant 0 : i32
    return %arg0, %c0_i32 : i32, i32
  }
}

</mosaic_0001>

<bundles_post_ra>
// kernel: tpu_custom_call.1
= control target key start
LH: loop header
LB: loop body
LE: loop exit
PB: predicated region body
PF: predicated region fallthrough
CT: control target
= control target key end

     0   :  { %10 = vsyncpa [#allocation3], 0  ;;  %s656_s0 = inlined_call_operand.hbm [shape: f32[8,4,256], index: 0, kind: input, shape index: {}]   ;;  %s657_s1 = inlined_call_operand.hbm [shape: f32[4,48], index: 1, kind: input, shape index: {}]   ;;  %s658_s2 = inlined_call_operand.vmem [shape: f32[1,48], index: 2, kind: input, shape index: {}]   ;;  %s659_s3 = inlined_call_operand.hbm [shape: f32[48,128], index: 3, kind: input, shape index: {}]   ;;  %s660_s4 = inlined_call_operand.vmem [shape: f32[1,128], index: 4, kind: input, shape index: {}]   ;;  %s661_s5 = inlined_call_operand.hbm [shape: f32[8,128], index: 5, kind: output, shape index: {}]  }
   0x1   :  { %11 = vsyncpa [#allocation6], 0 }
   0x2   :  { %12 = vsyncpa [#allocation4], 0  ;;  %s539_s18 = smov [#allocation5]   ;;  %s540_s20 = smov [#allocation2]  }
   0x3   :  { %s31_s19 = sshll.u32 %s539_s18, 4  ;;  %s18_s21 = sshll.u32 %s540_s20, 4  ;;  %s32_s19 = int_to_ptr.vmem [resolvable:$true] %s31_s19  ;;  %s578_s21 = int_to_ptr.vmem [resolvable:$true] %s18_s21 }
   0x4   :  { %s445_s24 = scalar_lea.hbm %s657_s1, 64 }
   0x5   :  { %p446_p0 = scmp.ne.s32.totalorder %s657_s1, %s445_s24  ;;  %p449_p1 = scmp.lt.u32.totalorder %s445_s24, %s657_s1 }
   0x7   :  { %p451_p2 = pnand %p449_p1, %p446_p0 }
   0x9   :  { %454 = shalt.err (!%p451_p2)
}
   0xa   :  { %s455_s29 = scalar_lea.vmem %s32_s19, 64  ;;  %p460_p4 = scmp.lt.s32.totalorder %s32_s19, %s32_s19 }
   0xb   :  { %p456_p3 = scmp.ne.s32.totalorder %s32_s19, %s455_s29  ;;  %p461_p5 = scmp.lt.s32.totalorder %s455_s29, %s455_s29 }
   0xd   :  { %p462_p6 = por %p461_p5, %p460_p4 }
   0xf   :  { %p463_p7 = pnand %p462_p6, %p456_p3 }
  0x11   :  { %466 = shalt.err (!%p463_p7)
}
  0x12   :  { %34 = dma.hbm_to_vmem [thread:$0]  %s657_s1, 64, %s32_s19, [#allocation6]  }
  0x13   :  { %s467_s9 = scalar_lea.hbm %s656_s0, 1024 }
  0x14   :  { %p468_p8 = scmp.ne.s32.totalorder %s656_s0, %s467_s9  ;;  %p471_p9 = scmp.lt.u32.totalorder %s467_s9, %s656_s0 }
  0x16   :  { %p473_p10 = pnand %p471_p9, %p468_p8 }
  0x18   :  { %476 = shalt.err (!%p473_p10)
}
  0x19   :  { %s477_s14 = scalar_lea.vmem %s578_s21, 1024  ;;  %p482_p12 = scmp.lt.s32.totalorder %s578_s21, %s578_s21 }
  0x1a   :  { %p478_p11 = scmp.ne.s32.totalorder %s578_s21, %s477_s14  ;;  %p483_p13 = scmp.lt.s32.totalorder %s477_s14, %s477_s14 }
  0x1c   :  { %p484_p0 = por %p483_p13, %p482_p12 }
  0x1e   :  { %p485_p1 = pnand %p484_p0, %p478_p11 }
  0x20   :  { %488 = shalt.err (!%p485_p1)
}
  0x21   :  { %s541_s1 = smov 128   ;;  %s542_s15 = smov 8  }
  0x22   :  { %24 = dma.hbm_to_vmem [thread:$0]  %s656_s0, 1024, %s578_s21, [#allocation3], %s541_s1, %s541_s1, %s542_s15  }
  0x23   :  { %s543_s18 = smov [#allocation7]   ;;  %s489_s23 = scalar_lea.hbm %s659_s3, 768 }
  0x24   :  { %s42_s19 = sshll.u32 %s543_s18, 4  ;;  %p490_p2 = scmp.ne.s32.totalorder %s659_s3, %s489_s23  ;;  %s43_s19 = int_to_ptr.vmem [resolvable:$true] %s42_s19 }
  0x25   :  { %p493_p3 = scmp.lt.u32.totalorder %s489_s23, %s659_s3 }
  0x27   :  { %p495_p4 = pnand %p493_p3, %p490_p2 }
  0x29   :  { %498 = shalt.err (!%p495_p4)
}
  0x2a   :  { %s499_s28 = scalar_lea.vmem %s43_s19, 768  ;;  %p504_p6 = scmp.lt.s32.totalorder %s43_s19, %s43_s19 }
  0x2b   :  { %p500_p5 = scmp.ne.s32.totalorder %s43_s19, %s499_s28  ;;  %p505_p7 = scmp.lt.s32.totalorder %s499_s28, %s499_s28 }
  0x2d   :  { %p506_p8 = por %p505_p7, %p504_p6 }
  0x2f   :  { %p507_p9 = pnand %p506_p8, %p500_p5 }
  0x31   :  { %510 = shalt.err (!%p507_p9)
}
  0x32   :  { %48 = dma.hbm_to_vmem [thread:$0]  %s659_s3, 768, %s43_s19, [#allocation6], %s541_s1, %s541_s1, %s542_s15  }
  0x33   :  { %533 = dma.done.wait [#allocation3], 1024  }
  0x34   :  { %534 = vsyncadd [#allocation3], 4294966272 }
  0x35   :  { %535 = dma.done.wait [#allocation6], 832  }
  0x36   :  { %536 = vsyncadd [#allocation6], 4294966464  ;;  %vm92_vm0 = vcmask 1043456   ;;  %v60_v0 = vld [vmem:[#allocation2] sm:$0xff]  ;;  %v62_v1 = vld [vmem:[#allocation2 + $0x10] sm:$0xff]  ;;  %v544_v41 = vmov 0.0   ;;  %v157_v49 = vlaneseq }
  0x37   :  { %v61_v2 = vld [vmem:[#allocation2 + $0x8] sm:$0xff]  ;;  %v76_v3 = vcombine.high %v60_v0, %v60_v0  ;;  %v93_v4 = vsel %vm92_vm0, %v60_v0, 0.0  ;;  %v78_v5 = vcombine.high %v62_v1, %v62_v1  ;;  %v103_v6 = vsel %vm92_vm0, %v62_v1, 0.0  ;;  %v63_v7 = vld [vmem:[#allocation2 + $0x18] sm:$0xff]  ;;  %v64_v8 = vld [vmem:[#allocation2 + $0x20] sm:$0xff]  ;;  %399 = vmatprep.subr.mxu0 %v544_v41  ;;  %s547_s7 = smov [#allocation8]  }
  0x38   :  { %v77_v9 = vcombine.high %v61_v2, %v61_v2  ;;  %v98_v10 = vsel %vm92_vm0, %v61_v2, 0.0  ;;  %v79_v11 = vcombine.high %v63_v7, %v63_v7  ;;  %v65_v12 = vld [vmem:[#allocation2 + $0x28] sm:$0xff]  ;;  %v108_v15 = vsel %vm92_vm0, %v63_v7, 0.0  ;;  %v66_v21 = vld [vmem:[#allocation2 + $0x30] sm:$0xff]  ;;  %v67_v22 = vld [vmem:[#allocation2 + $0x38] sm:$0xff]  ;;  %s375_s8 = sshll.u32 %s547_s7, 4  ;;  %s376_s8 = int_to_ptr.vmem [resolvable:$true] %s375_s8 }
  0x39   :  { %v94_v13 = vsel %vm92_vm0, %v76_v3, 0.0  ;;  %v104_v14 = vsel %vm92_vm0, %v78_v5, 0.0  ;;  %v80_v16 = vcombine.high %v64_v8, %v64_v8  ;;  %v81_v23 = vcombine.high %v65_v12, %v65_v12  ;;  %v141_v40 = vld [vmem:[#allocation5] sm:$0xf]  ;;  %v281_v42 = vld [vmem:[#allocation7] sm:$0xff]  ;;  %v282_v43 = vld [vmem:[#allocation7 + $0x8] sm:$0xff]  ;;  %p516_p11 = scmp.lt.s32.totalorder %s376_s8, %s376_s8 }
  0x3a   :  { %v95_v17 = vadd.f32 %v94_v13, %v93_v4  ;;  %v105_v18 = vadd.f32 %v104_v14, %v103_v6  ;;  %v99_v19 = vsel %vm92_vm0, %v77_v9, 0.0  ;;  %v109_v20 = vsel %vm92_vm0, %v79_v11, 0.0  ;;  %400 = vmatpush3.msk.msra.mxu0 %vm92_vm0, %v141_v40  ;;  %v283_v44 = vld [vmem:[#allocation7 + $0x10] sm:$0xff]  ;;  %v284_v47 = vld [vmem:[#allocation7 + $0x18] sm:$0xff]  ;;  %s511_s9 = scalar_lea.vmem %s376_s8, 128 }
  0x3b   :  { %v100_v24 = vadd.f32 %v99_v19, %v98_v10  ;;  %v110_v25 = vadd.f32 %v109_v20, %v108_v15  ;;  %v113_v26 = vsel %vm92_vm0, %v64_v8, 0.0  ;;  %v114_v27 = vsel %vm92_vm0, %v80_v16, 0.0  ;;  %v285_v20 = vld [vmem:[#allocation7 + $0x20] sm:$0xff]  ;;  %p512_p10 = scmp.ne.s32.totalorder %s376_s8, %s511_s9  ;;  %p517_p12 = scmp.lt.s32.totalorder %s511_s9, %s511_s9 }
  0x3c   :  { %96 = vadd.xlane.f32.xlu0 %v95_v17  ;;  %106 = vadd.xlane.f32.xlu1 %v105_v18  ;;  %v118_v28 = vsel %vm92_vm0, %v65_v12, 0.0  ;;  %v119_v29 = vsel %vm92_vm0, %v81_v23, 0.0  ;;  %v82_v30 = vcombine.high %v66_v21, %v66_v21  ;;  %v83_v31 = vcombine.high %v67_v22, %v67_v22  ;;  %v385_v23 = vld [vmem:[%s658_s2] ss:$0 sm:$0xff] }
  0x3d   :  { %v115_v32 = vadd.f32 %v114_v27, %v113_v26  ;;  %v120_v33 = vadd.f32 %v119_v29, %v118_v28  ;;  %v123_v34 = vsel %vm92_vm0, %v66_v21, 0.0  ;;  %v128_v36 = vsel %vm92_vm0, %v67_v22, 0.0  ;;  %v286_v21 = vld [vmem:[#allocation7 + $0x28] sm:$0xff]  ;;  %v388_v27 = vld [vmem:[%s660_s4] ss:$0 sm:$0xff]  ;;  %p518_p13 = por %p517_p12, %p516_p11 }
  0x3e   :  { %v124_v35 = vsel %vm92_vm0, %v82_v30, 0.0  ;;  %v129_v37 = vsel %vm92_vm0, %v83_v31, 0.0  ;;  %vm545_vm1 = vmmov 0   ;;  %v546_v45 = vmov 0.0|0.0  }
  0x3f   :  { %v125_v38 = vadd.f32 %v124_v35, %v123_v34  ;;  %v130_v39 = vadd.f32 %v129_v37, %v128_v36  ;;  %401 = vmatprep.mubr.msk.f32.mxu0 %vm545_vm1, %v544_v41  ;;  %416 = vmatprep.mubr.msk.f32.mxu1 %vm545_vm1, %v544_v41  ;;  %v420_v46 = vpack.c.bf16 %v282_v43, %v281_v42  ;;  %v158_v50 = vand.u32 127, %v157_v49  ;;  %p519_p0 = pnand %p518_p13, %p512_p10 }
  0x40   :  { %101 = vadd.xlane.f32.xlu0 %v100_v24  ;;  %111 = vadd.xlane.f32.xlu1 %v110_v25  ;;  %v423_v48 = vpack.c.bf16 %v284_v47, %v283_v44  ;;  %v160_v51 = vshrl.u32 %v157_v49, 7  ;;  %vm191_vm2 = vcmask 1041409   ;;  %vm193_vm3 = vcmask 1042434  }
  0x41   :  { %419 = vmatprep.subr.bf16.mxu1 %v546_v45  ;;  %vm195_vm4 = vcmask 1043459   ;;  %vm197_vm5 = vcmask 1044484   ;;  %vm199_vm6 = vcmask 1045509   ;;  %vm201_vm7 = vcmask 1046534  }
  0x42   :  { %421 = vmatpush3.bf16.msra.mxu1 %v420_v46  ;;  %v161_v54 = vsub.s32 %v158_v50, %v160_v51  ;;  %vm203_vm8 = vcmask 1047559   ;;  %vm205_vm9 = vcmask 31744   ;;  %v426_v22 = vpack.c.bf16 %v286_v21, %v285_v20 }
  0x43   :  { %422 = vmatprep.subr.bf16.mxu1 %v546_v45  ;;  %vm294_vm10 = vcmask 392192  }
  0x44   :  { %116 = vadd.xlane.f32.xlu0 %v115_v32  ;;  %121 = vadd.xlane.f32.xlu1 %v120_v33 }
  0x46   :  { %424 = vmatpush3.bf16.msra.mxu1 %v423_v48 }
  0x47   :  { %425 = vmatprep.subr.bf16.mxu1 %v546_v45 }
  0x48   :  { %126 = vadd.xlane.f32.xlu0 %v125_v38  ;;  %131 = vadd.xlane.f32.xlu1 %v130_v39 }
  0x4a   :  { %427 = vmatpush3.bf16.msra.mxu1 %v426_v22 }
  0xc9   :  { %v97_v52 = vpop.xlane.xlu0 %96  ;;  %v107_v53 = vpop.xlane.xlu1 %106 }
  0xca   :  { %v133_v55 = vmul.f32 0.00390625, %v97_v52  ;;  %v135_v56 = vmul.f32 0.00390625, %v107_v53 }
  0xcc   :  { %v162_v61 = vrot.slane %v133_v55, %v161_v54  ;;  %v170_v0 = vrot.slane %v135_v56, %v161_v54 }
  0xcd   :  { %v102_v57 = vpop.xlane.xlu0 %101  ;;  %v112_v58 = vpop.xlane.xlu1 %111 }
  0xce   :  { %v134_v59 = vmul.f32 0.00390625, %v102_v57  ;;  %v136_v60 = vmul.f32 0.00390625, %v112_v58 }
  0xd0   :  { %v166_v62 = vrot.slane %v134_v59, %v161_v54  ;;  %v174_v63 = vrot.slane %v136_v60, %v161_v54 }
  0xd1   :  { %v117_v1 = vpop.xlane.xlu0 %116  ;;  %v122_v2 = vpop.xlane.xlu1 %121 }
  0xd2   :  { %v192_v3 = vsel %vm191_vm2, %v166_v62, %v162_v61  ;;  %v137_v4 = vmul.f32 0.00390625, %v117_v1  ;;  %v138_v5 = vmul.f32 0.00390625, %v122_v2 }
  0xd3   :  { %v194_v6 = vsel %vm193_vm3, %v170_v0, %v192_v3 }
  0xd4   :  { %v196_v7 = vsel %vm195_vm4, %v174_v63, %v194_v6  ;;  %v178_v8 = vrot.slane %v137_v4, %v161_v54  ;;  %v182_v9 = vrot.slane %v138_v5, %v161_v54 }
  0xd5   :  { %v127_v10 = vpop.xlane.xlu0 %126  ;;  %v132_v11 = vpop.xlane.xlu1 %131 }
  0xd6   :  { %v198_v12 = vsel %vm197_vm5, %v178_v8, %v196_v7  ;;  %v139_v13 = vmul.f32 0.00390625, %v127_v10  ;;  %v140_v14 = vmul.f32 0.00390625, %v132_v11 }
  0xd7   :  { %v200_v17 = vsel %vm199_vm6, %v182_v9, %v198_v12 }
  0xd8   :  { %v186_v15 = vrot.slane %v139_v13, %v161_v54  ;;  %v190_v16 = vrot.slane %v140_v14, %v161_v54 }
  0xda   :  { %v202_v18 = vsel %vm201_vm7, %v186_v15, %v200_v17 }
  0xdb   :  { %v204_v19 = vsel %vm203_vm8, %v190_v16, %v202_v18 }
  0xdc   :  { %402 = vmatmul.mubr.msk.f32.vlgmr.msra.gmra.mrb[0].mxu0 %vm205_vm9, %v204_v19 }
 0x1af   :  { %v277_v24 = vpop.f32.mrb[0].mxu0 }
 0x1b0   :  { %v278_v25 = vadd.f32 %v385_v23, %v277_v24  ;;  %v403_v26 = vpop.f32.mrb[1].mxu0 }
 0x1b2   :  { %417 = vmatmul.mubr.msk.f32.vlgmr.msra.gmra.mrb[0].mxu1 %vm294_vm10, %v278_v25 }
 0x285   :  { %v364_v28 = vpop.f32.mrb[0].mxu1 }
 0x286   :  { %v365_v29 = vadd.f32 %v388_v27, %v364_v28  ;;  %v418_v30 = vpop.f32.mrb[1].mxu1 }
 0x288   :  { %368 = vst [vmem:[#allocation8] sm:$0xff] %v365_v29 }
 0x289   :  { %522 = shalt.err (!%p519_p0)
}
 0x28a   :  { %s523_s11 = scalar_lea.hbm %s661_s5, 128 }
 0x28b   :  { %p524_p1 = scmp.ne.s32.totalorder %s661_s5, %s523_s11  ;;  %p527_p2 = scmp.lt.u32.totalorder %s523_s11, %s661_s5 }
 0x28d   :  { %p529_p3 = pnand %p527_p2, %p524_p1 }
 0x28f   :  { %532 = shalt.err (!%p529_p3)
}
 0x290   :  { %378 = dma.vmem_to_hbm [thread:$0]  %s376_s8, 128, %s661_s5, [#allocation4]  }
 0x291   :  { %537 = dma.done.wait [#allocation4], 128  }
 0x292   :  { %538 = vsyncadd [#allocation4], 4294967168 }
 0x293   :  { %382 = vsyncpa [#allocation3], 1 }
 0x294   :  { %383 = vsyncpa [#allocation6], 1 }
 0x295   :  { %384 = vsyncpa [#allocation4], 1 }

</bundles_post_ra>
